<compile_context>
chip_gen: v7x
topology: tpu7x:2x2x1
jax: 0.10.0
libtpu: 0.0.40
codegen_flags: <defaults>
</compile_context>

<pallas_src>
import jax
import jax.numpy as jnp
from jax.experimental import pallas as pl
from jax.experimental.pallas import tpu as pltpu


def _make_kernel(K, t_out):
    """Builds the kernel for one (batch, sequence-tile) grid step.

    Ref layouts (feature-major, sequence in lanes):
      xa, xb  : (F,  W)  two consecutive sequence blocks of x^T  (halo source)
      lra,lrb : (FL, W)  two consecutive sequence blocks of lr^T
      wc      : (K, C, F)   per-tap conv weights, transposed
      bc      : (C, 1)
      w1c     : (H, C)      w1[:C, :]^T   (concat -> split matmul)
      w1l     : (H, FL)     w1[C:, :]^T
      b1,b2   : (H, 1)      w2 : (H, H)^T
      w3      : (FL, H)     b3 : (FL, 1)
      out     : (FL, t_out) out^T tile (lane-dense stores)
    """

    def kernel(xa_ref, xb_ref, lra_ref, lrb_ref, wc_ref, bc_ref, w1c_ref,
               w1l_ref, b1_ref, w2_ref, b2_ref, w3_ref, b3_ref, out_ref):
        f32 = jnp.float32
        # 2W-wide windows: conv shifts and the lr K-1 offset are static slices.
        xcat = jnp.concatenate([xa_ref[...], xb_ref[...]], axis=-1)     # (F, 2W)
        lrcat = jnp.concatenate([lra_ref[...], lrb_ref[...]], axis=-1)  # (FL, 2W)
        lr_c = lrcat[:, K - 1:K - 1 + t_out]                            # (FL, t)

        # conv1d (valid) as K shifted (C,F)@(F,t) matmuls, bias + ReLU.
        conv = None
        for k in range(K):
            part = jnp.dot(wc_ref[k], xcat[:, k:k + t_out],
                           preferred_element_type=f32)
            conv = part if conv is None else conv + part
        conv = jnp.maximum(conv + bc_ref[...], 0.0)                     # (C, t)

        # MLP layer 1: w1^T @ concat([conv, lr])  ==  w1c^T@conv + w1l^T@lr
        h = (jnp.dot(w1c_ref[...], conv, preferred_element_type=f32)
             + jnp.dot(w1l_ref[...], lr_c, preferred_element_type=f32)
             + b1_ref[...])
        h = jnp.maximum(h, 0.0)                                         # (H, t)
        # MLP layer 2
        h = jnp.maximum(
            jnp.dot(w2_ref[...], h, preferred_element_type=f32) + b2_ref[...],
            0.0)
        # MLP layer 3 (no activation) + residual with the cropped lr
        y = jnp.dot(w3_ref[...], h, preferred_element_type=f32) + b3_ref[...]
        out_ref[...] = (lr_c + y).astype(out_ref.dtype)

    return kernel


def lrconv_forward(x, lr, params, *, tile_s=8192):
    """x: (B, S, conv_features), lr: (B, S, lr_features) -> (B, S-K+1, lr_features) f32."""
    wc, bc, w1, b1, w2, b2, w3, b3 = [jnp.asarray(p, jnp.float32) for p in params]
    B, S, F = x.shape
    K, Fw, C = wc.shape
    assert Fw == F, (Fw, F)
    FL = w3.shape[-1]
    H = w1.shape[-1]
    assert w1.shape[0] == C + FL, (w1.shape, C, FL)
    S_out = S - K + 1
    assert S_out >= 1, "sequence shorter than conv width"

    # --- feature-major ("rows in lanes") layout; no HBM im2col, no lr-crop copy
    xt = jnp.transpose(x.astype(jnp.float32), (0, 2, 1))     # (B, F,  S)
    lrt = jnp.transpose(lr.astype(jnp.float32), (0, 2, 1))   # (B, FL, S)

    wc_t = jnp.transpose(wc, (0, 2, 1))    # (K, C, F)
    w1c_t = jnp.transpose(w1[:C, :])       # (H, C)
    w1l_t = jnp.transpose(w1[C:, :])       # (H, FL)
    w2_t = jnp.transpose(w2)               # (H, H)
    w3_t = jnp.transpose(w3)               # (FL, H)
    bc_c = bc.reshape(C, 1)
    b1_c = b1.reshape(H, 1)
    b2_c = b2.reshape(H, 1)
    b3_c = b3.reshape(FL, 1)

    # --- sequence tiling: lane dim must be a multiple of 128 (or full length) --
    tile = int(max(128, min(int(tile_s), 8192)))   # cap fits v5e 16MiB scoped VMEM
    steps_wanted = max(1, 4 // B)                  # prefer a multi-step grid (v7x)
    t = min(tile, -(-S_out // steps_wanted))
    t = (t // 128) * 128

    if t < 128 or t >= S_out:
        # One sequence tile per batch element: full-length blocks, no halo needed.
        # (The second x / lr operand is redundant here but keeps one kernel form.)
        t = S_out
        n_tiles = 1
        x_shape, lr_shape = (None, F, S), (None, FL, S)
        xa_map = xb_map = lambda b, s: (b, 0, 0)
        lra_map = lrb_map = lambda b, s: (b, 0, 0)
    else:
        n_tiles = pl.cdiv(S_out, t)
        nxb = pl.cdiv(S, t)            # blocks available along the (longer) S axis
        x_shape, lr_shape = (None, F, t), (None, FL, t)
        xa_map = lambda b, s: (b, 0, s)
        xb_map = lambda b, s: (b, 0, jnp.minimum(s + 1, nxb - 1))   # K-1 halo block
        lra_map = lambda b, s: (b, 0, s)
        lrb_map = lambda b, s: (b, 0, jnp.minimum(s + 1, nxb - 1))

    def w_spec(a):   # weights / biases: constant index map -> VMEM-resident
        if a.ndim == 2:
            return pl.BlockSpec(a.shape, lambda b, s: (0, 0))
        return pl.BlockSpec(a.shape, lambda b, s: (0, 0, 0))

    out_t = pl.pallas_call(
        _make_kernel(K, t),
        out_shape=jax.ShapeDtypeStruct((B, FL, S_out), jnp.float32),
        grid=(B, n_tiles),
        in_specs=[
            pl.BlockSpec(x_shape, xa_map),
            pl.BlockSpec(x_shape, xb_map),
            pl.BlockSpec(lr_shape, lra_map),
            pl.BlockSpec(lr_shape, lrb_map),
            w_spec(wc_t), w_spec(bc_c),
            w_spec(w1c_t), w_spec(w1l_t), w_spec(b1_c),
            w_spec(w2_t), w_spec(b2_c),
            w_spec(w3_t), w_spec(b3_c),
        ],
        out_specs=pl.BlockSpec((None, FL, t), lambda b, s: (b, 0, s)),
        compiler_params=pltpu.CompilerParams(
            dimension_semantics=("parallel", "parallel")),
    )(xt, xt, lrt, lrt, wc_t, bc_c, w1c_t, w1l_t, b1_c, w2_t, b2_c, w3_t, b3_c)

    # back to the module's natural (B, S_out, FL) layout (layout plumbing only)
    return jnp.transpose(out_t, (0, 2, 1))


def lrconv_reference(x, lr, params):
    """Pure-JAX reference (same math) for validation."""
    wc, bc, w1, b1, w2, b2, w3, b3 = params
    K = wc.shape[0]
    S = x.shape[1]
    S_out = S - K + 1
    acc = jnp.zeros((x.shape[0], S_out, wc.shape[2]), jnp.float32)
    for k in range(K):
        acc = acc + jnp.einsum('bsf,fc->bsc', x[:, k:k + S_out, :], wc[k])
    conv = jnp.maximum(acc + bc, 0.0)
    lr_c = lr[:, S - S_out:, :]
    cat = jnp.concatenate([conv, lr_c], axis=-1)
    h = jnp.maximum(jnp.einsum('bsi,ih->bsh', cat, w1) + b1, 0.0)
    h = jnp.maximum(jnp.einsum('bsi,ih->bsh', h, w2) + b2, 0.0)
    y = jnp.einsum('bsi,io->bso', h, w3) + b3
    return lr_c + y


if __name__ == "__main__":
    # LrConv(conv_features=4, conv_width=3, lr_features=8, conv_out=16, mlp_layers=3)
    CONV_FEATURES, CONV_WIDTH, LR_FEATURES, CONV_OUT = 4, 3, 8, 16
    HIDDEN = LR_FEATURES + CONV_OUT          # mlp hidden = lr_features + conv_out

    key = jax.random.PRNGKey(0)
    ks = jax.random.split(key, 12)

    wc = jax.random.normal(ks[0], (CONV_WIDTH, CONV_FEATURES, CONV_OUT), jnp.float32) * 0.1
    bc = jax.random.normal(ks[1], (1, 1, CONV_OUT), jnp.float32) * 0.1
    w1 = jax.random.normal(ks[2], (CONV_OUT + LR_FEATURES, HIDDEN), jnp.float32) * 0.1
    b1 = jax.random.normal(ks[3], (1, 1, HIDDEN), jnp.float32) * 0.1
    w2 = jax.random.normal(ks[4], (HIDDEN, HIDDEN), jnp.float32) * 0.1
    b2 = jax.random.normal(ks[5], (1, 1, HIDDEN), jnp.float32) * 0.1
    w3 = jax.random.normal(ks[6], (HIDDEN, LR_FEATURES), jnp.float32) * 0.1
    b3 = jax.random.normal(ks[7], (1, 1, LR_FEATURES), jnp.float32) * 0.1
    params = (wc, bc, w1, b1, w2, b2, w3, b3)

    # --- test 1: small shapes, single sequence tile per batch ---------------
    B, S = 2, 16
    x = jax.random.normal(ks[8], (B, S, CONV_FEATURES), jnp.float32)
    lr = jax.random.normal(ks[9], (B, S, LR_FEATURES), jnp.float32)
    out = jax.block_until_ready(lrconv_forward(x, lr, params))
    ref = lrconv_reference(x, lr, params)
    assert out.shape == (B, S - CONV_WIDTH + 1, LR_FEATURES), out.shape
    assert jnp.allclose(out, ref, atol=2e-2, rtol=2e-2), "mismatch (small)"

    # --- test 2: multi-tile grid, cross-tile halo, ragged last tile ----------
    B2, S2 = 2, 300              # S_out = 298 -> tiles [0,128) [128,256) [256,298)
    x2 = jax.random.normal(ks[10], (B2, S2, CONV_FEATURES), jnp.float32)
    lr2 = jax.random.normal(ks[11], (B2, S2, LR_FEATURES), jnp.float32)
    out2 = jax.block_until_ready(lrconv_forward(x2, lr2, params, tile_s=128))
    ref2 = lrconv_reference(x2, lr2, params)
    assert out2.shape == (B2, S2 - CONV_WIDTH + 1, LR_FEATURES), out2.shape
    assert jnp.allclose(out2, ref2, atol=2e-2, rtol=2e-2), "mismatch (tiled)"

    print("KERNEL_OK")
</pallas_src>

<mosaic_0001>
module attributes {stable_mosaic.version = 11 : i64} {
  func.func @kernel(%arg0: i32, %arg1: i32, %arg2: memref<1x4x16xf32, #tpu.memory_space<vmem>>, %arg3: memref<1x4x16xf32, #tpu.memory_space<vmem>>, %arg4: memref<1x8x16xf32, #tpu.memory_space<vmem>>, %arg5: memref<1x8x16xf32, #tpu.memory_space<vmem>>, %arg6: memref<3x16x4xf32, #tpu.memory_space<vmem>>, %arg7: memref<16x1xf32, #tpu.memory_space<vmem>>, %arg8: memref<24x16xf32, #tpu.memory_space<vmem>>, %arg9: memref<24x8xf32, #tpu.memory_space<vmem>>, %arg10: memref<24x1xf32, #tpu.memory_space<vmem>>, %arg11: memref<24x24xf32, #tpu.memory_space<vmem>>, %arg12: memref<24x1xf32, #tpu.memory_space<vmem>>, %arg13: memref<8x24xf32, #tpu.memory_space<vmem>>, %arg14: memref<8x1xf32, #tpu.memory_space<vmem>>, %arg15: memref<1x8x14xf32, #tpu.memory_space<vmem>>) attributes {dimension_semantics = [#tpu.dimension_semantics<parallel>, #tpu.dimension_semantics<parallel>], iteration_bounds = array<i64: 2, 1>, scalar_prefetch = 0 : i64, scratch_operands = 0 : i64, tpu.core_type = #tpu.core_type<tc>, window_params = [{transform_indices = @transform_0, window_bounds = array<i64: 1, 4, 16>}, {transform_indices = @transform_1, window_bounds = array<i64: 1, 4, 16>}, {transform_indices = @transform_2, window_bounds = array<i64: 1, 8, 16>}, {transform_indices = @transform_3, window_bounds = array<i64: 1, 8, 16>}, {pipeline_mode = #tpu.pipeline_mode<synchronous>, transform_indices = @transform_4, window_bounds = array<i64: 3, 16, 4>}, {pipeline_mode = #tpu.pipeline_mode<synchronous>, transform_indices = @transform_5, window_bounds = array<i64: 16, 1>}, {pipeline_mode = #tpu.pipeline_mode<synchronous>, transform_indices = @transform_6, window_bounds = array<i64: 24, 16>}, {pipeline_mode = #tpu.pipeline_mode<synchronous>, transform_indices = @transform_7, window_bounds = array<i64: 24, 8>}, {pipeline_mode = #tpu.pipeline_mode<synchronous>, transform_indices = @transform_8, window_bounds = array<i64: 24, 1>}, {pipeline_mode = #tpu.pipeline_mode<synchronous>, transform_indices = @transform_9, window_bounds = array<i64: 24, 24>}, {pipeline_mode = #tpu.pipeline_mode<synchronous>, transform_indices = @transform_10, window_bounds = array<i64: 24, 1>}, {pipeline_mode = #tpu.pipeline_mode<synchronous>, transform_indices = @transform_11, window_bounds = array<i64: 8, 24>}, {pipeline_mode = #tpu.pipeline_mode<synchronous>, transform_indices = @transform_12, window_bounds = array<i64: 8, 1>}, {transform_indices = @transform_13, window_bounds = array<i64: 1, 8, 14>}]} {
    %c0 = arith.constant 0 : index
    %c0_0 = arith.constant 0 : index
    %c0_1 = arith.constant 0 : index
    %0 = vector.load %arg2[%c0, %c0_0, %c0_1] : memref<1x4x16xf32, #tpu.memory_space<vmem>>, vector<1x4x16xf32>
    %1 = vector.shape_cast %0 : vector<1x4x16xf32> to vector<4x16xf32>
    %c0_2 = arith.constant 0 : index
    %c0_3 = arith.constant 0 : index
    %c0_4 = arith.constant 0 : index
    %2 = vector.load %arg3[%c0_2, %c0_3, %c0_4] : memref<1x4x16xf32, #tpu.memory_space<vmem>>, vector<1x4x16xf32>
    %3 = vector.shape_cast %2 : vector<1x4x16xf32> to vector<4x16xf32>
    %4 = tpu.concatenate %1, %3 in 1 : vector<4x16xf32>, vector<4x16xf32> -> vector<4x32xf32>
    %c0_5 = arith.constant 0 : index
    %c0_6 = arith.constant 0 : index
    %c0_7 = arith.constant 0 : index
    %5 = vector.load %arg4[%c0_5, %c0_6, %c0_7] : memref<1x8x16xf32, #tpu.memory_space<vmem>>, vector<1x8x16xf32>
    %6 = vector.shape_cast %5 : vector<1x8x16xf32> to vector<8x16xf32>
    %c0_8 = arith.constant 0 : index
    %c0_9 = arith.constant 0 : index
    %c0_10 = arith.constant 0 : index
    %7 = vector.load %arg5[%c0_8, %c0_9, %c0_10] : memref<1x8x16xf32, #tpu.memory_space<vmem>>, vector<1x8x16xf32>
    %8 = vector.shape_cast %7 : vector<1x8x16xf32> to vector<8x16xf32>
    %9 = tpu.concatenate %6, %8 in 1 : vector<8x16xf32>, vector<8x16xf32> -> vector<8x32xf32>
    %10 = vector.extract_strided_slice %9 {offsets = [0, 2], sizes = [8, 14], strides = [1, 1]} : vector<8x32xf32> to vector<8x14xf32>
    %c0_11 = arith.constant 0 : index
    %c0_12 = arith.constant 0 : index
    %c0_13 = arith.constant 0 : index
    %11 = vector.load %arg6[%c0_11, %c0_12, %c0_13] : memref<3x16x4xf32, #tpu.memory_space<vmem>>, vector<1x16x4xf32>
    %12 = vector.shape_cast %11 : vector<1x16x4xf32> to vector<16x4xf32>
    %13 = vector.extract_strided_slice %4 {offsets = [0, 0], sizes = [4, 14], strides = [1, 1]} : vector<4x32xf32> to vector<4x14xf32>
    %cst = arith.constant dense<0.000000e+00> : vector<16x14xf32>
    %14 = tpu.matmul %12, %13, %cst {dimension_numbers = #tpu.dot_dimension_numbers<[1], [0], [0], [1], [0, 0, 1, 1], [], []>} : vector<16x4xf32>, vector<4x14xf32>, vector<16x14xf32> -> vector<16x14xf32>
    %c1 = arith.constant 1 : index
    %c0_14 = arith.constant 0 : index
    %c0_15 = arith.constant 0 : index
    %15 = vector.load %arg6[%c1, %c0_14, %c0_15] : memref<3x16x4xf32, #tpu.memory_space<vmem>>, vector<1x16x4xf32>
    %16 = vector.shape_cast %15 : vector<1x16x4xf32> to vector<16x4xf32>
    %17 = vector.extract_strided_slice %4 {offsets = [0, 1], sizes = [4, 14], strides = [1, 1]} : vector<4x32xf32> to vector<4x14xf32>
    %cst_16 = arith.constant dense<0.000000e+00> : vector<16x14xf32>
    %18 = tpu.matmul %16, %17, %cst_16 {dimension_numbers = #tpu.dot_dimension_numbers<[1], [0], [0], [1], [0, 0, 1, 1], [], []>} : vector<16x4xf32>, vector<4x14xf32>, vector<16x14xf32> -> vector<16x14xf32>
    %19 = arith.addf %14, %18 : vector<16x14xf32>
    %c2 = arith.constant 2 : index
    %c0_17 = arith.constant 0 : index
    %c0_18 = arith.constant 0 : index
    %20 = vector.load %arg6[%c2, %c0_17, %c0_18] : memref<3x16x4xf32, #tpu.memory_space<vmem>>, vector<1x16x4xf32>
    %21 = vector.shape_cast %20 : vector<1x16x4xf32> to vector<16x4xf32>
    %22 = vector.extract_strided_slice %4 {offsets = [0, 2], sizes = [4, 14], strides = [1, 1]} : vector<4x32xf32> to vector<4x14xf32>
    %cst_19 = arith.constant dense<0.000000e+00> : vector<16x14xf32>
    %23 = tpu.matmul %21, %22, %cst_19 {dimension_numbers = #tpu.dot_dimension_numbers<[1], [0], [0], [1], [0, 0, 1, 1], [], []>} : vector<16x4xf32>, vector<4x14xf32>, vector<16x14xf32> -> vector<16x14xf32>
    %24 = arith.addf %19, %23 : vector<16x14xf32>
    %c0_20 = arith.constant 0 : index
    %c0_21 = arith.constant 0 : index
    %25 = vector.load %arg7[%c0_20, %c0_21] : memref<16x1xf32, #tpu.memory_space<vmem>>, vector<16x1xf32>
    %26 = vector.broadcast %25 : vector<16x1xf32> to vector<16x14xf32>
    %27 = arith.addf %24, %26 : vector<16x14xf32>
    %cst_22 = arith.constant 0.000000e+00 : f32
    %28 = vector.broadcast %cst_22 : f32 to vector<16x14xf32>
    %29 = arith.maximumf %27, %28 : vector<16x14xf32>
    %c0_23 = arith.constant 0 : index
    %c0_24 = arith.constant 0 : index
    %30 = vector.load %arg8[%c0_23, %c0_24] : memref<24x16xf32, #tpu.memory_space<vmem>>, vector<24x16xf32>
    %cst_25 = arith.constant dense<0.000000e+00> : vector<24x14xf32>
    %31 = tpu.matmul %30, %29, %cst_25 {dimension_numbers = #tpu.dot_dimension_numbers<[1], [0], [0], [1], [0, 0, 1, 1], [], []>} : vector<24x16xf32>, vector<16x14xf32>, vector<24x14xf32> -> vector<24x14xf32>
    %c0_26 = arith.constant 0 : index
    %c0_27 = arith.constant 0 : index
    %32 = vector.load %arg9[%c0_26, %c0_27] : memref<24x8xf32, #tpu.memory_space<vmem>>, vector<24x8xf32>
    %cst_28 = arith.constant dense<0.000000e+00> : vector<24x14xf32>
    %33 = tpu.matmul %32, %10, %cst_28 {dimension_numbers = #tpu.dot_dimension_numbers<[1], [0], [0], [1], [0, 0, 1, 1], [], []>} : vector<24x8xf32>, vector<8x14xf32>, vector<24x14xf32> -> vector<24x14xf32>
    %34 = arith.addf %31, %33 : vector<24x14xf32>
    %c0_29 = arith.constant 0 : index
    %c0_30 = arith.constant 0 : index
    %35 = vector.load %arg10[%c0_29, %c0_30] : memref<24x1xf32, #tpu.memory_space<vmem>>, vector<24x1xf32>
    %36 = vector.broadcast %35 : vector<24x1xf32> to vector<24x14xf32>
    %37 = arith.addf %34, %36 : vector<24x14xf32>
    %cst_31 = arith.constant 0.000000e+00 : f32
    %38 = vector.broadcast %cst_31 : f32 to vector<24x14xf32>
    %39 = arith.maximumf %37, %38 : vector<24x14xf32>
    %c0_32 = arith.constant 0 : index
    %c0_33 = arith.constant 0 : index
    %40 = vector.load %arg11[%c0_32, %c0_33] : memref<24x24xf32, #tpu.memory_space<vmem>>, vector<24x24xf32>
    %cst_34 = arith.constant dense<0.000000e+00> : vector<24x14xf32>
    %41 = tpu.matmul %40, %39, %cst_34 {dimension_numbers = #tpu.dot_dimension_numbers<[1], [0], [0], [1], [0, 0, 1, 1], [], []>} : vector<24x24xf32>, vector<24x14xf32>, vector<24x14xf32> -> vector<24x14xf32>
    %c0_35 = arith.constant 0 : index
    %c0_36 = arith.constant 0 : index
    %42 = vector.load %arg12[%c0_35, %c0_36] : memref<24x1xf32, #tpu.memory_space<vmem>>, vector<24x1xf32>
    %43 = vector.broadcast %42 : vector<24x1xf32> to vector<24x14xf32>
    %44 = arith.addf %41, %43 : vector<24x14xf32>
    %cst_37 = arith.constant 0.000000e+00 : f32
    %45 = vector.broadcast %cst_37 : f32 to vector<24x14xf32>
    %46 = arith.maximumf %44, %45 : vector<24x14xf32>
    %c0_38 = arith.constant 0 : index
    %c0_39 = arith.constant 0 : index
    %47 = vector.load %arg13[%c0_38, %c0_39] : memref<8x24xf32, #tpu.memory_space<vmem>>, vector<8x24xf32>
    %cst_40 = arith.constant dense<0.000000e+00> : vector<8x14xf32>
    %48 = tpu.matmul %47, %46, %cst_40 {dimension_numbers = #tpu.dot_dimension_numbers<[1], [0], [0], [1], [0, 0, 1, 1], [], []>} : vector<8x24xf32>, vector<24x14xf32>, vector<8x14xf32> -> vector<8x14xf32>
    %c0_41 = arith.constant 0 : index
    %c0_42 = arith.constant 0 : index
    %49 = vector.load %arg14[%c0_41, %c0_42] : memref<8x1xf32, #tpu.memory_space<vmem>>, vector<8x1xf32>
    %50 = vector.broadcast %49 : vector<8x1xf32> to vector<8x14xf32>
    %51 = arith.addf %48, %50 : vector<8x14xf32>
    %52 = arith.addf %10, %51 : vector<8x14xf32>
    %c0_43 = arith.constant 0 : index
    %c0_44 = arith.constant 0 : index
    %c0_45 = arith.constant 0 : index
    %53 = vector.load %arg15[%c0_43, %c0_44, %c0_45] : memref<1x8x14xf32, #tpu.memory_space<vmem>>, vector<1x8x14xf32>
    %54 = vector.shape_cast %53 : vector<1x8x14xf32> to vector<8x14xf32>
    %55 = vector.shape_cast %52 : vector<8x14xf32> to vector<1x8x14xf32>
    tpu.vector_store %arg15[%c0_43, %c0_44, %c0_45], %55 {strides = array<i32>} : memref<1x8x14xf32, #tpu.memory_space<vmem>>, vector<1x8x14xf32>,
    return
  }
  func.func @transform_0(%arg0: i32, %arg1: i32) -> (i32, i32, i32) {
    %c0_i32 = arith.constant 0 : i32
    %c0_i32_0 = arith.constant 0 : i32
    %c0_i32_1 = arith.constant 0 : i32
    return %arg0, %c0_i32, %c0_i32_0 : i32, i32, i32
  }
  func.func @transform_1(%arg0: i32, %arg1: i32) -> (i32, i32, i32) {
    %c0_i32 = arith.constant 0 : i32
    %c0_i32_0 = arith.constant 0 : i32
    %c0_i32_1 = arith.constant 0 : i32
    return %arg0, %c0_i32, %c0_i32_0 : i32, i32, i32
  }
  func.func @transform_2(%arg0: i32, %arg1: i32) -> (i32, i32, i32) {
    %c0_i32 = arith.constant 0 : i32
    %c0_i32_0 = arith.constant 0 : i32
    %c0_i32_1 = arith.constant 0 : i32
    return %arg0, %c0_i32, %c0_i32_0 : i32, i32, i32
  }
  func.func @transform_3(%arg0: i32, %arg1: i32) -> (i32, i32, i32) {
    %c0_i32 = arith.constant 0 : i32
    %c0_i32_0 = arith.constant 0 : i32
    %c0_i32_1 = arith.constant 0 : i32
    return %arg0, %c0_i32, %c0_i32_0 : i32, i32, i32
  }
  func.func @transform_4(%arg0: i32, %arg1: i32) -> (i32, i32, i32) {
    %c0_i32 = arith.constant 0 : i32
    %c0_i32_0 = arith.constant 0 : i32
    %c0_i32_1 = arith.constant 0 : i32
    %c0_i32_2 = arith.constant 0 : i32
    return %c0_i32, %c0_i32_0, %c0_i32_1 : i32, i32, i32
  }
  func.func @transform_5(%arg0: i32, %arg1: i32) -> (i32, i32) {
    %c0_i32 = arith.constant 0 : i32
    %c0_i32_0 = arith.constant 0 : i32
    %c0_i32_1 = arith.constant 0 : i32
    return %c0_i32, %c0_i32_0 : i32, i32
  }
  func.func @transform_6(%arg0: i32, %arg1: i32) -> (i32, i32) {
    %c0_i32 = arith.constant 0 : i32
    %c0_i32_0 = arith.constant 0 : i32
    %c0_i32_1 = arith.constant 0 : i32
    return %c0_i32, %c0_i32_0 : i32, i32
  }
  func.func @transform_7(%arg0: i32, %arg1: i32) -> (i32, i32) {
    %c0_i32 = arith.constant 0 : i32
    %c0_i32_0 = arith.constant 0 : i32
    %c0_i32_1 = arith.constant 0 : i32
    return %c0_i32, %c0_i32_0 : i32, i32
  }
  func.func @transform_8(%arg0: i32, %arg1: i32) -> (i32, i32) {
    %c0_i32 = arith.constant 0 : i32
    %c0_i32_0 = arith.constant 0 : i32
    %c0_i32_1 = arith.constant 0 : i32
    return %c0_i32, %c0_i32_0 : i32, i32
  }
  func.func @transform_9(%arg0: i32, %arg1: i32) -> (i32, i32) {
    %c0_i32 = arith.constant 0 : i32
    %c0_i32_0 = arith.constant 0 : i32
    %c0_i32_1 = arith.constant 0 : i32
    return %c0_i32, %c0_i32_0 : i32, i32
  }
  func.func @transform_10(%arg0: i32, %arg1: i32) -> (i32, i32) {
    %c0_i32 = arith.constant 0 : i32
    %c0_i32_0 = arith.constant 0 : i32
    %c0_i32_1 = arith.constant 0 : i32
    return %c0_i32, %c0_i32_0 : i32, i32
  }
  func.func @transform_11(%arg0: i32, %arg1: i32) -> (i32, i32) {
    %c0_i32 = arith.constant 0 : i32
    %c0_i32_0 = arith.constant 0 : i32
    %c0_i32_1 = arith.constant 0 : i32
    return %c0_i32, %c0_i32_0 : i32, i32
  }
  func.func @transform_12(%arg0: i32, %arg1: i32) -> (i32, i32) {
    %c0_i32 = arith.constant 0 : i32
    %c0_i32_0 = arith.constant 0 : i32
    %c0_i32_1 = arith.constant 0 : i32
    return %c0_i32, %c0_i32_0 : i32, i32
  }
  func.func @transform_13(%arg0: i32, %arg1: i32) -> (i32, i32, i32) {
    %c0_i32 = arith.constant 0 : i32
    %c0_i32_0 = arith.constant 0 : i32
    return %arg0, %c0_i32, %arg1 : i32, i32, i32
  }
}

</mosaic_0001>

<bundles_post_ra>
// kernel: tpu_custom_call.1
= control target key start
LH: loop header
LB: loop body
LE: loop exit
PB: predicated region body
PF: predicated region fallthrough
CT: control target
= control target key end

     0   :  { %s1951_s0 = inlined_call_operand.vmem [shape: f32[2,4,16], index: 0, kind: input, shape index: {}]   ;;  %s1952_s1 = inlined_call_operand.vmem [shape: f32[2,4,16], index: 1, kind: input, shape index: {}]   ;;  %s1953_s2 = inlined_call_operand.vmem [shape: f32[2,8,16], index: 2, kind: input, shape index: {}]   ;;  %s1954_s3 = inlined_call_operand.vmem [shape: f32[2,8,16], index: 3, kind: input, shape index: {}]   ;;  %s1955_s4 = inlined_call_operand.vmem [shape: f32[3,16,4], index: 4, kind: input, shape index: {}]   ;;  %s1956_s5 = inlined_call_operand.vmem [shape: f32[16,1], index: 5, kind: input, shape index: {}]   ;;  %s1957_s6 = inlined_call_operand.vmem [shape: f32[24,16], index: 6, kind: input, shape index: {}]   ;;  %s1958_s7 = inlined_call_operand.vmem [shape: f32[24,8], index: 7, kind: input, shape index: {}]   ;;  %s1959_s8 = inlined_call_operand.vmem [shape: f32[24,1], index: 8, kind: input, shape index: {}]   ;;  %s1960_s9 = inlined_call_operand.vmem [shape: f32[24,24], index: 9, kind: input, shape index: {}]   ;;  %s1961_s10 = inlined_call_operand.vmem [shape: f32[24,1], index: 10, kind: input, shape index: {}]   ;;  %s1962_s11 = inlined_call_operand.vmem [shape: f32[8,24], index: 11, kind: input, shape index: {}]   ;;  %s1963_s12 = inlined_call_operand.vmem [shape: f32[8,1], index: 12, kind: input, shape index: {}]   ;;  %s1964_s13 = inlined_call_operand.hbm [shape: f32[2,8,14], index: 13, kind: output, shape index: {}]  }
   0x1   :  { %1969 = sst [smem:[#allocation10_spill]] %s1952_s1 }
   0x2   :  { %18 = vsyncpa [#allocation3], 0 }
   0x3   :  { %20 = vsyncpa [#allocation3 + $0x1], 0  ;;  %s1700_s25 = smov 0   ;;  %s1702_s26 = smov 0  }
   0x4   :  { %s1704_s27 = smov 0   ;;  %s1706_s28 = smov 0  }
   0x5   :  { %s1708_s29 = smov 0   ;;  %s1710_s30 = smov 0  }
   0x6 LB: > { %1970 = sst [smem:[#allocation5_spill]] %s1607_s27  ;;  %s1335_s14 = sadd.s32 4294967295, %s1619_s30   ;;  %s1619_s30 = sphi %s1710_s30, %s26_s30   ;;  %s1615_s29 = sphi %s1708_s29, %s1982_s29   ;;  %s1611_s28 = sphi %s1706_s28, %s1981_s28   ;;  %s1607_s27 = sphi %s1704_s27, %s1985_s27   ;;  %s1603_s26 = sphi %s1702_s26, %s1984_s26   ;;  %s1599_s25 = sphi %s1700_s25, %s1983_s25  }
   0x7   : > { %1971 = sst [smem:[#allocation6_spill]] %s1615_s29  ;;  %s1336_s15 = sadd.s32 4294967294, %s1619_s30  }
   0x8   : > { %s38_s16 = sadd.s32 1, %s1615_s29  ;;  %s340_s17 = sadd.s32 1, %s1607_s27 }
   0x9   : > { %p40_p0 = scmp.ge.s32.totalorder %s38_s16, 2  ;;  %p350_p1 = scmp.ne.s32.totalorder %s1607_s27, %s1603_s26 }
   0xa   : > { %p351_p2 = scmp.eq.s32.totalorder %s1335_s14, 1  ;;  %p356_p3 = scmp.ne.s32.totalorder %s1603_s26, %s1599_s25 }
   0xb   : > { %s1987_s16 = smov (%p40_p0, %s38_s16), 0  ;;  %p357_p5 = scmp.eq.s32.totalorder %s1336_s15, 1 }
   0xc   : > { %1972 = sst [smem:[#allocation7_spill]] %s1987_s16  ;;  %p1740_p4 = por %p351_p2, %p350_p1 }
   0xd   : > { %s335_s19 = ssub.s32 %s1615_s29, %s1987_s16  ;;  %p1339_p6 = scmp.ge.s32.totalorder %s1619_s30, 1 }
   0xe   : > { %p338_p7 = scmp.eq.s32.totalorder %s335_s19, 0  ;;  %p1747_p8 = por %p357_p5, %p356_p3 }
   0xf   : > { %p430_p9 = scmp.lt.s32.totalorder %s1619_s30, 3 }
  0x10   : > { %s1974_s20 = scalar_select %p1747_p8, 1, 0 }
  0x11   : > { %s1753_s21 = scalar_select %p338_p7, %s1607_s27, %s340_s17  }
  0x12   : > { %1975 = sst [smem:[#allocation8_spill]] %s1974_s20  ;;  %p431_p10 = pnand %p1339_p6, %p430_p9 }
  0x13   : > { %1976 = sst [smem:[#allocation9_spill]] %s1753_s21  ;;  %p485_p11 = scmp.lt.s32.totalorder (!%p431_p10), %s1611_s28, 1  ;;  %v1345_v1 = vld [vmem:[%s1955_s4 + $0x10] sm:$0xff] (!%p431_p10)  ;;  %vm524_vm0 = vcmask (!%p431_p10), 31744   ;;  %vm507_vm1 = vcmask (!%p431_p10), 130048   ;;  %v783_v6 = vld [vmem:[%s1956_s5 + $0x8] sm:$0xff] (!%p431_p10) }
  0x14   : > { %434 = sbr.rel (%p431_p10) target bundleno = 1419 (0x58b), region = 72  ;;  %s1977_s1 = sld [smem:[#allocation10_spill]] (!%p431_p10)  ;;  %1402 = vmatprep.mubr.msk.f32.mxu0 (!%p431_p10), %vm524_vm0, %v1345_v1  ;;  %v782_v7 = vld [vmem:[%s1956_s5] sm:$0xff] (!%p431_p10)  ;;  %v1624_v8 = vmov (!%p431_p10), 0   ;;  %v989_v10 = vld [vmem:[%s1959_s8 + $0x10] sm:$0xff] (!%p431_p10)  ;;  %v1015_v11 = vld [vmem:[%s1961_s10 + $0x8] sm:$0xff] (!%p431_p10) }
  0x15   : > { %s1621_s19 = smov (!%p431_p10), 16   ;;  %s1623_s16 = smov (!%p431_p10), 127   ;;  %1540 = vset.pattern.permute.xlu1 (!%p431_p10), %v1624_v8  ;;  %1539 = vset.pattern.permute.xlu0 (!%p431_p10), %v1624_v8  ;;  %v987_v9 = vld [vmem:[%s1959_s8] sm:$0xff] (!%p431_p10)  ;;  %vm531_vm2 = vcmask (!%p431_p10), 1043456   ;;  %v1346_v15 = vld [vmem:[%s1955_s4 + $0x18] sm:$0xff] (!%p431_p10)  ;;  %v988_v20 = vld [vmem:[%s1959_s8 + $0x8] sm:$0xff] (!%p431_p10) }
  0x16   : > { %v1126_v12 = vld [vmem:[%s1963_s12] sm:$0xff] (!%p431_p10)  ;;  %v517_v21 = vld [vmem:[%s1955_s4 + $0x8] sm:$0xff] (!%p431_p10)  ;;  %v1016_v24 = vld [vmem:[%s1961_s10 + $0x10] sm:$0xff] (!%p431_p10)  ;;  %v1625_v26 = vmov (!%p431_p10), 0.0|0.0   ;;  %v1626_v27 = vmov (!%p431_p10), 0.0   ;;  %vm1627_vm3 = vmmov (!%p431_p10), 0  }
  0x17   : > { %v516_v16 = vld [vmem:[%s1955_s4] sm:$0xff] (!%p431_p10)  ;;  %v1354_v25 = vld [vmem:[%s1955_s4 + $0x28] sm:$0xff] (!%p431_p10)  ;;  %1415 = vmatprep.subr.mxu1 (!%p431_p10), %v1626_v27  ;;  %1417 = vmatprep.mubr.msk.f32.mxu1 (!%p431_p10), %vm1627_vm3, %v1626_v27  ;;  %vm808_vm4 = vcmask (!%p431_p10), 64512   ;;  %v803_v32 = vld [vmem:[%s1958_s7 + $0x10] sm:$0xff] (!%p431_p10)  ;;  %vm1032_vm5 = vcmask (!%p431_p10), 195584   ;;  %vm1214_vm6 = vcmask (!%p431_p10), 113664  }
  0x18   : > { %v1353_v22 = vld [vmem:[%s1955_s4 + $0x20] sm:$0xff] (!%p431_p10)  ;;  %v802_v31 = vld [vmem:[%s1958_s7 + $0x8] sm:$0xff] (!%p431_p10)  ;;  %v800_v43 = vld [vmem:[%s1957_s6 + $0x10] sm:$0xff] (!%p431_p10) }
  0x19   : > { %v1014_v23 = vld [vmem:[%s1961_s10] sm:$0xff] (!%p431_p10)  ;;  %v799_v42 = vld [vmem:[%s1957_s6 + $0x8] sm:$0xff] (!%p431_p10) }
  0x1a   : > { %v801_v29 = vld [vmem:[%s1958_s7] sm:$0xff] (!%p431_p10) }
  0x1b   : > { %s1757_s22 = scalar_select %p485_p11, %s1611_s28, 1  ;;  %v798_v41 = vld [vmem:[%s1957_s6] sm:$0xff] }
  0x1d   : > { %s1341_s23 = sshll.u32 %s1757_s22, 2  ;;  %s1343_s20 = sshll.u32 %s1757_s22, 3 }
  0x1e   : > { %s492_s15 = scalar_lea.vmem %s1977_s1, %s1341_s23  ;;  %s488_s27 = scalar_lea.vmem %s1951_s0, %s1341_s23 }
  0x1f   : > { %v502_v0 = vld [vmem:[%s492_s15] sm:$0xf]  ;;  %s500_s15 = scalar_lea.vmem %s1954_s3, %s1343_s20  ;;  %s1622_s1 = smov 126  }
  0x20   : > { %504 = vrot.lane.b32.xlu0 %v502_v0, %s1621_s19  ;;  %v501_v2 = vld [vmem:[%s488_s27] sm:$0xf]  ;;  %s496_s21 = scalar_lea.vmem %s1953_s2, %s1343_s20  ;;  %s1628_s22 = smov 2  }
  0x21   : > { %v510_v5 = vld [vmem:[%s500_s15] sm:$0xff]  ;;  %s482_s23 = sand.u32 1, %s1603_s26  }
  0x22   : > { %v509_v17 = vld [vmem:[%s496_s21] sm:$0xff]  ;;  %s1340_s24 = sshll.u32 %s482_s23, 3  ;;  %s1217_s29 = scalar_lea.sflag [#allocation3], %s482_s23 }
  0x23   : > { %s484_s20 = scalar_lea.vmem [#allocation2], %s1340_s24 }
  0x24   : > { %s1231_s14 = sshll.u32 %s484_s20, 4  ;;  %s1906_s14 = int_to_ptr.vmem [resolvable:$true] %s1231_s14 }
  0x92   : > { %v505_v3 = vpop.permute.xlu0 %504 }
  0x93   : > { %v508_v4 = vsel %vm507_vm1, %v501_v2, %v505_v3 }
  0x94   : > { %695 = vrot.lane.b32.xlu1 %v508_v4, %s1622_s1  ;;  %522 = vrot.lane.b32.xlu0 %v508_v4, %s1623_s16 }
  0x98   : > { %512 = vrot.lane.b32.xlu1 %v510_v5, %s1621_s19  ;;  %786 = vperm.xlu0 %1539, %v782_v7   ;;  %v1011_v5 = vld [vmem:[%s1960_s9] sm:$0xff]  ;;  %v1013_v7 = vld [vmem:[%s1960_s9 + $0x10] sm:$0xff]  ;;  %s1369_s19 = sshll.u32 %s1611_s28, 7  ;;  %s1629_s28 = smov [#allocation2]  }
  0x99   : > { %s1904_s17 = scalar_lea.hbm %s1964_s13, %s1369_s19  ;;  %s1545_s27 = sshll.u32 %s1629_s28, 4  ;;  %s1546_s27 = int_to_ptr.vmem [resolvable:$false] %s1545_s27 }
  0x9a   : > { %s1547_s21 = scalar_lea.vmem %s1546_s27, 256  ;;  %p1548_p1 = scmp.lt.s32.totalorder %s1906_s14, %s1546_s27 }
  0x9c   : > { %791 = vperm.xlu1 %1540, %v783_v6   ;;  %992 = vperm.xlu0 %1539, %v987_v9   ;;  %v1012_v6 = vld [vmem:[%s1960_s9 + $0x8] sm:$0xff] }
  0xa0   : > { %1002 = vperm.xlu0 %1539, %v989_v10  }
  0xa4   : > { %1024 = vperm.xlu0 %1539, %v1015_v11  }
  0xa8   : > { %1129 = vperm.xlu0 %1539, %v1126_v12  }
 0x106   : > { %v696_v13 = vpop.permute.xlu1 %695  ;;  %v523_v14 = vpop.permute.xlu0 %522 }
 0x107   : > { %1400 = vmatprep.subr.msk.mxu0 %vm531_vm2, %v523_v14 }
 0x108   : > { %1401 = vmatpush3.msk.msra.mxu0 %vm531_vm2, %v523_v14 }
 0x109   : > { %1403 = vmatmul.mubr.msk.f32.vlgmr.msra.gmra.mrb[0].mxu0 %vm524_vm0, %v1346_v15  ;;  %1405 = vmatprep.subr.msk.mxu0 %vm531_vm2, %v508_v4 }
 0x10a   : > { %1406 = vmatpush3.msk.msra.mxu0 %vm531_vm2, %v508_v4  ;;  %1407 = vmatprep.mubr.msk.f32.mxu0 %vm524_vm0, %v516_v16  ;;  %v513_v18 = vpop.permute.xlu1 %512 }
 0x10b   : > { %1410 = vmatprep.subr.msk.mxu0 %vm531_vm2, %v696_v13  ;;  %v1811_v19 = vsel %vm507_vm1, %v509_v17, %v513_v18 }
 0x10c   : > { %805 = vrot.lane.b32.xlu1 %v1811_v19, %s1622_s1 }
 0x110   : > { %997 = vperm.xlu1 %1540, %v988_v20  }
 0x111   : > { %1408 = vmatmul.mubr.msk.f32.vlgmr.msra.gmra.mrb[0].mxu0 %vm524_vm0, %v517_v21 }
 0x112   : > { %1411 = vmatpush3.msk.msra.mxu0 %vm531_vm2, %v696_v13  ;;  %1412 = vmatprep.mubr.msk.f32.mxu0 %vm524_vm0, %v1353_v22 }
 0x113   : > { %1463 = vmatprep.subr.bf16.mxu0 %v1625_v26 }
 0x114   : > { %1019 = vperm.xlu1 %1540, %v1014_v23  }
 0x117   : > { %v787_v34 = vpop.permute.xlu0 %786 }
 0x118   : > { %1029 = vperm.xlu1 %1540, %v1016_v24  }
 0x119   : > { %1413 = vmatmul.mubr.msk.f32.vlgmr.msra.gmra.mrb[0].mxu0 %vm524_vm0, %v1354_v25  ;;  %v1125_v25 = vld [vmem:[%s1962_s11] sm:$0xff] }
 0x11a   : > { %1430 = vmatprep.mubr.msk.f32.mxu0 %vm1627_vm3, %v1626_v27 }
 0x11b   : > { %v792_v28 = vpop.permute.xlu1 %791  ;;  %v993_v53 = vpop.permute.xlu0 %992 }
 0x11f   : > { %v1003_v1 = vpop.permute.xlu0 %1002 }
 0x123   : > { %v1025_v12 = vpop.permute.xlu0 %1024 }
 0x17e   : > { %v806_v30 = vpop.permute.xlu1 %805 }
 0x17f   : > { %1416 = vmatpush3.msra.mxu1 %v806_v30 }
 0x180   : > { %1418 = vmatmul.mubr.msk.f32.vlgmr.msra.gmra.mrb[0].mxu1 %vm808_vm4, %v801_v29  ;;  %1466 = vmatprep.subr.bf16.mxu1 %v1625_v26 }
 0x181   : > { %1420 = vmatprep.mubr.msk.f32.mxu1 %vm1627_vm3, %v1626_v27 }
 0x184   : > { %1421 = vmatmul.mubr.msk.f32.gmra.mrb[2].mxu1 %vm808_vm4, %v802_v31 }
 0x185   : > { %1423 = vmatprep.mubr.msk.f32.mxu1 %vm1627_vm3, %v1626_v27 }
 0x188   : > { %1424 = vmatmul.mubr.msk.f32.gmra.mrb[4].mxu1 %vm808_vm4, %v803_v32 }
 0x189   : > { %1445 = vmatprep.mubr.msk.f32.mxu1 %vm1627_vm3, %v1626_v27 }
 0x18f   : > { %v998_v58 = vpop.permute.xlu1 %997 }
 0x193   : > { %v1020_v10 = vpop.permute.xlu1 %1019 }
 0x197   : > { %v1030_v18 = vpop.permute.xlu1 %1029 }
 0x1ec   : > { %v1414_v33 = vpop.f32.mrb[0].mxu0 }
 0x1ed   : > { %v795_v35 = vadd.f32 %v1414_v33, %v792_v28  ;;  %v771_v36 = vpop.f32.mrb[1].mxu0 }
 0x1ee   : > { %v794_v37 = vadd.f32 %v787_v34, %v771_v36 }
 0x1ef   : > { %v797_v38 = vmax.f32 %v795_v35, 0.0 }
 0x1f0   : > { %v796_v39 = vmax.f32 %v794_v37, 0.0 }
 0x1f2   : > { %v1464_v40 = vpack.c.bf16 %v797_v38, %v796_v39 }
 0x1f4   : > { %1465 = vmatpush3.bf16.msra.mxu0 %v1464_v40 }
 0x1f5   : > { %1469 = vmatprep.subr.bf16.mxu0 %v1625_v26  ;;  %v1130_v26 = vpop.permute.xlu0 %1129 }
 0x1f7   : > { %1431 = vmatmul.mubr.msk.f32.vlgmr.msra.gmra.mrb[2].mxu0 %vm507_vm1, %v798_v41 }
 0x1f8   : > { %1433 = vmatprep.mubr.msk.f32.mxu0 %vm1627_vm3, %v1626_v27 }
 0x1fb   : > { %1434 = vmatmul.mubr.msk.f32.gmra.mrb[4].mxu0 %vm507_vm1, %v799_v42 }
 0x1fc   : > { %1436 = vmatprep.mubr.msk.f32.mxu0 %vm1627_vm3, %v1626_v27 }
 0x1ff   : > { %1437 = vmatmul.mubr.msk.f32.gmra.mrb[6].mxu0 %vm507_vm1, %v800_v43 }
 0x200   : > { %1460 = vmatprep.mubr.msk.f32.mxu0 %vm1627_vm3, %v1626_v27 }
 0x253   : > { %v884_v44 = vpop.f32.mrb[0].mxu1 }
 0x254   : > { %v1419_v45 = vpop.f32.mrb[1].mxu1 }
 0x257   : > { %v889_v46 = vpop.f32.mrb[2].mxu1 }
 0x258   : > { %v1422_v47 = vpop.f32.mrb[3].mxu1 }
 0x25b   : > { %v894_v48 = vpop.f32.mrb[4].mxu1 }
 0x25c   : > { %v1425_v49 = vpop.f32.mrb[5].mxu1 }
 0x2ca   : > { %v973_v50 = vpop.f32.mrb[2].mxu0 }
 0x2cb   : > { %v974_v51 = vadd.f32 %v973_v50, %v884_v44  ;;  %v1432_v52 = vpop.f32.mrb[3].mxu0 }
 0x2cd   : > { %v1005_v55 = vadd.f32 %v993_v53, %v974_v51 }
 0x2ce   : > { %v978_v54 = vpop.f32.mrb[4].mxu0 }
 0x2cf   : > { %v979_v56 = vadd.f32 %v978_v54, %v889_v46  ;;  %v1435_v57 = vpop.f32.mrb[5].mxu0  ;;  %v1008_v61 = vmax.f32 %v1005_v55, 0.0 }
 0x2d1   : > { %v1006_v59 = vadd.f32 %v998_v58, %v979_v56 }
 0x2d2   : > { %v983_v60 = vpop.f32.mrb[6].mxu0 }
 0x2d3   : > { %v1009_v62 = vmax.f32 %v1006_v59, 0.0  ;;  %v984_v63 = vadd.f32 %v983_v60, %v894_v48  ;;  %v1438_v0 = vpop.f32.mrb[7].mxu0 }
 0x2d5   : > { %v1467_v2 = vpack.c.bf16 %v1009_v62, %v1008_v61  ;;  %v1007_v3 = vadd.f32 %v1003_v1, %v984_v63 }
 0x2d7   : > { %1468 = vmatpush3.bf16.msra.mxu1 %v1467_v2  ;;  %v1010_v4 = vmax.f32 %v1007_v3, 0.0 }
 0x2d8   : > { %1443 = vmatprep.subr.mxu1 %v1626_v27 }
 0x2db   : > { %1444 = vmatpush3.msra.mxu1 %v1010_v4 }
 0x2dc   : > { %1446 = vmatmul.mubr.msk.f32.vlgmr.msra.gmra.mrb[6].mxu1 %vm1032_vm5, %v1011_v5 }
 0x2dd   : > { %1448 = vmatprep.mubr.msk.f32.mxu1 %vm1627_vm3, %v1626_v27 }
 0x2e0   : > { %1449 = vmatmul.mubr.msk.f32.gmra.mrb[8].mxu1 %vm1032_vm5, %v1012_v6 }
 0x2e1   : > { %1451 = vmatprep.mubr.msk.f32.mxu1 %vm1627_vm3, %v1626_v27 }
 0x2e4   : > { %1452 = vmatmul.mubr.msk.f32.gmra.mrb[10].mxu1 %vm1032_vm5, %v1013_v7 }
 0x3af   : > { %v1108_v8 = vpop.f32.mrb[6].mxu1 }
 0x3b0   : > { %v1447_v9 = vpop.f32.mrb[7].mxu1  ;;  %v1109_v11 = vadd.f32 %v1108_v8, %v1020_v10 }
 0x3b2   : > { %v1122_v16 = vmax.f32 %v1109_v11, 0.0 }
 0x3b3   : > { %v1113_v13 = vpop.f32.mrb[8].mxu1 }
 0x3b4   : > { %v1114_v14 = vadd.f32 %v1113_v13, %v1025_v12  ;;  %v1450_v15 = vpop.f32.mrb[9].mxu1 }
 0x3b6   : > { %v1123_v17 = vmax.f32 %v1114_v14, 0.0 }
 0x3b7   : > { %v1118_v20 = vpop.f32.mrb[10].mxu1 }
 0x3b8   : > { %v1470_v21 = vpack.c.bf16 %v1123_v17, %v1122_v16  ;;  %v1119_v22 = vadd.f32 %v1118_v20, %v1030_v18  ;;  %v1453_v23 = vpop.f32.mrb[11].mxu1 }
 0x3ba   : > { %1471 = vmatpush3.bf16.msra.mxu0 %v1470_v21  ;;  %v1124_v24 = vmax.f32 %v1119_v22, 0.0 }
 0x3bb   : > { %1458 = vmatprep.subr.mxu0 %v1626_v27 }
 0x3be   : > { %1459 = vmatpush3.msra.mxu0 %v1124_v24 }
 0x3bf   : > { %1461 = vmatmul.mubr.msk.f32.vlgmr.msra.gmra.mrb[8].mxu0 %vm1032_vm5, %v1125_v25 }
 0x492   : > { %v1201_v28 = vpop.f32.mrb[8].mxu0 }
 0x493   : > { %v1202_v29 = vadd.f32 %v1201_v28, %v1130_v26  ;;  %v1462_v30 = vpop.f32.mrb[9].mxu0 }
 0x495   : > { %1206 = vrot.lane.b32.xlu1 %v1202_v29, %s1628_s22 }
 0x507   : > { %v1207_v31 = vpop.permute.xlu1 %1206 }
 0x508   : > { %v1209_v32 = vadd.f32 %v1207_v31, %v1811_v19 }
 0x50a   : > { %1211 = vrot.lane.b32.xlu0 %v1209_v32, %s1622_s1  ;;  %s1541_s1 = scalar_lea.vmem %s1906_s14, 128 }
 0x50b   : > { %p1542_p12 = scmp.ne.s32.totalorder %s1906_s14, %s1541_s1  ;;  %p1549_p2 = scmp.lt.s32.totalorder %s1547_s21, %s1541_s1 }
 0x50d   : > { %p1543_p13 = pnand %p1542_p12, %p1740_p4  ;;  %p1550_p3 = por %p1549_p2, %p1548_p1 }
 0x50f   : > { %p1544_p0 = pneg %p1543_p13 }
 0x511   : > { %p1551_p5 = pnand %p1550_p3, %p1544_p0 }
 0x57c   : > { %v1212_v27 = vpop.permute.xlu0 %1211 }
 0x57d   : > { %1215 = vst.msk [vmem:[%s484_s20] sm:$0xff] %vm1214_vm6, %v1212_v27 }
 0x57e   : > { %1554 = shalt.err (!%p1551_p5)
}
 0x57f   : > { %s1555_s22 = scalar_lea.hbm %s1904_s17, 128  ;;  %s1559_s19 = scalar_lea.hbm %s1964_s13, 256 }
 0x580   : > { %p1556_p6 = scmp.ne.s32.totalorder %s1904_s17, %s1555_s22  ;;  %p1560_p10 = scmp.lt.u32.totalorder %s1904_s17, %s1964_s13 }
 0x581   : > { %p1561_p11 = scmp.lt.u32.totalorder %s1559_s19, %s1555_s22  ;;  %p1563_p13 = scmp.lt.u32.totalorder %s1555_s22, %s1904_s17 }
 0x582   : > { %p1557_p7 = pnand %p1556_p6, %p1740_p4 }
 0x583   : > { %p1562_p12 = por %p1561_p11, %p1560_p10 }
 0x584   : > { %p1558_p9 = pneg %p1557_p7 }
 0x585   : > { %p1564_p0 = por %p1563_p13, %p1562_p12 }
 0x587   : > { %p1565_p1 = pnand %p1564_p0, %p1558_p9 }
 0x589   : > { %1568 = shalt.err (!%p1565_p1)
}
 0x58a   : > { %1476 = dma.vmem_to_hbm [thread:$0]  (%p1740_p4), %s1906_s14, 128, %s1904_s17, %s1217_s29  }
 0x58b PF: > { %p1482_p2 = scmp.ge.s32.totalorder %s1619_s30, 2  ;;  %s1243_s1 = sand.u32 1, %s1599_s25  }
 0x58c   : > { %s1244_s28 = scalar_lea.sflag [#allocation3], %s1243_s1 }
 0x58d   : > { %p1479_p3 = pnand %p1482_p2, %p1747_p8 }
 0x58f   : > { %1594 = dma.done.wait (!%p1479_p3), %s1244_s28, 128  }
 0x590   : > { %1596 = vsyncadd (!%p1479_p3), %s1244_s28, 4294967168  ;;  %s26_s30 = sadd.s32 1, %s1619_s30   ;;  %s1979_s27 = sld [smem:[#allocation5_spill]] }
 0x591   : > { %p23_p5 = scmp.ge.s32.totalorder %s26_s30, 4   ;;  %s1980_s18 = sld [smem:[#allocation9_spill]] }
 0x592   : > { %s1981_s28 = sld [smem:[#allocation6_spill]]  ;;  %s1982_s29 = sld [smem:[#allocation7_spill]] }
 0x593   : > { %s1983_s25 = smov %s1603_s26  ;;  %25 = sbr.rel (!%p23_p5) target bundleno = 6 (0x6), region = 118 }
 0x596   : > { %s1984_s26 = smov %s1979_s27 }
 0x597   : > { %s1985_s27 = smov %s1980_s18 }
 0x59a   :  { %1249 = vsyncpa [#allocation3], 1 }
 0x59b   :  { %1251 = vsyncpa [#allocation3 + $0x1], 1 }

</bundles_post_ra>
